<compile_context>
chip_gen: v7x
topology: tpu7x:2x2x1
jax: 0.10.0
libtpu: 0.0.40
codegen_flags: <defaults>
</compile_context>

<pallas_src>
import functools

import jax
import jax.numpy as jnp
from jax import lax
from jax.experimental import pallas as pl
from jax.experimental.pallas import tpu as pltpu


def _head_kernel(q_ref, k_ref, v_ref, wq_ref, wk_ref, wv_ref, o_ref,
                 qp_ref, m_ref, l_ref, acc_ref,
                 *, scale, tq, tk, num_kv, use_mask):
    qi = pl.program_id(1)
    ki = pl.program_id(2)

    # --- init accumulators + project q once per (b, q-block) ------------------
    @pl.when(ki == 0)
    def _init():
        m_ref[...] = jnp.full(m_ref.shape, -jnp.inf, dtype=m_ref.dtype)
        l_ref[...] = jnp.zeros(l_ref.shape, dtype=l_ref.dtype)
        acc_ref[...] = jnp.zeros(acc_ref.shape, dtype=acc_ref.dtype)
        qp = jnp.dot(q_ref[...].astype(jnp.bfloat16),
                     wq_ref[...].astype(jnp.bfloat16),
                     preferred_element_type=jnp.float32)
        # fold the 1/sqrt(head_size) scale into the cached q projection (f32),
        # then keep it in bf16 since it only ever feeds the MXU.
        qp_ref[...] = (qp * scale).astype(jnp.bfloat16)

    q_start = qi * tq
    kv_start = ki * tk

    def _compute():
        # k / v projections for this kv tile (bf16 in, f32 accumulate).
        kp = jnp.dot(k_ref[...].astype(jnp.bfloat16),
                     wk_ref[...].astype(jnp.bfloat16),
                     preferred_element_type=jnp.float32).astype(jnp.bfloat16)
        vp = jnp.dot(v_ref[...].astype(jnp.bfloat16),
                     wv_ref[...].astype(jnp.bfloat16),
                     preferred_element_type=jnp.float32).astype(jnp.bfloat16)

        # scores: contract last axis of both operands (no explicit transpose).
        s = lax.dot_general(
            qp_ref[...], kp,
            dimension_numbers=(((1,), (1,)), ((), ())),
            preferred_element_type=jnp.float32)

        if use_mask:
            row = q_start + lax.broadcasted_iota(jnp.int32, (tq, tk), 0)
            col = kv_start + lax.broadcasted_iota(jnp.int32, (tq, tk), 1)
            s = jnp.where(col <= row, s, -jnp.inf)

        # online softmax update (all f32 on the VPU/EUP).
        m_prev = m_ref[...]
        m_new = jnp.maximum(m_prev, jnp.max(s, axis=-1, keepdims=True))
        alpha = jnp.exp(m_prev - m_new)
        p = jnp.exp(s - m_new)
        l_ref[...] = alpha * l_ref[...] + jnp.sum(p, axis=-1, keepdims=True)
        acc_ref[...] = alpha * acc_ref[...] + jnp.dot(
            p.astype(jnp.bfloat16), vp, preferred_element_type=jnp.float32)
        m_ref[...] = m_new

    if use_mask:
        # skip kv blocks that are entirely above the causal diagonal.
        @pl.when(kv_start <= q_start + (tq - 1))
        def _maybe_compute():
            _compute()
    else:
        _compute()

    # --- finalize: normalize once, lane-dense store ---------------------------
    @pl.when(ki == num_kv - 1)
    def _finalize():
        inv_l = pl.reciprocal(l_ref[...], approx=True)
        o_ref[...] = (acc_ref[...] * inv_l).astype(o_ref.dtype)


def _choose_tile(T, preferred):
    for t in (preferred, 512, 256, 128, 64, 32, 16, 8):
        if t is None:
            continue
        if t <= T and T % t == 0:
            return t
    return T


def head_forward(k, q, v, wk, wq, wv, *, use_mask=False, tq=None, tk=None):
    B, T, E = k.shape
    H = wk.shape[1]
    out_dtype = q.dtype

    # Pad the value/output head dim to a multiple of 128 so output stores are
    # lane-dense (unmasked vst). Padded wv columns are zero -> padded output
    # columns are zero and are sliced off below.
    H_pad = ((H + 127) // 128) * 128
    wv_p = wv if H_pad == H else jnp.pad(wv, ((0, 0), (0, H_pad - H)))

    tq = _choose_tile(T, tq if tq is not None else 256)
    tk = _choose_tile(T, tk if tk is not None else 512)
    num_q = T // tq
    num_kv = T // tk

    scale = float(H) ** (-0.5)   # PyTorch uses C = head_size after projection

    kernel = functools.partial(
        _head_kernel, scale=scale, tq=tq, tk=tk, num_kv=num_kv, use_mask=use_mask)

    q_spec = pl.BlockSpec((pl.Squeezed(), tq, E), lambda b, i, j: (b, i, 0))
    kv_spec = pl.BlockSpec((pl.Squeezed(), tk, E), lambda b, i, j: (b, j, 0))
    wqk_spec = pl.BlockSpec((E, H), lambda b, i, j: (0, 0))
    wv_spec = pl.BlockSpec((E, H_pad), lambda b, i, j: (0, 0))
    out_spec = pl.BlockSpec((pl.Squeezed(), tq, H_pad), lambda b, i, j: (b, i, 0))

    cost = pl.CostEstimate(
        flops=int(2 * B * T * E * (2 * H + H_pad)
                  + 2 * B * T * T * H + 2 * B * T * T * H_pad),
        transcendentals=int(B * T * T),
        bytes_accessed=int(4 * (3 * B * T * E + 2 * E * H + E * H_pad
                                + B * T * H_pad)),
    )

    out = pl.pallas_call(
        kernel,
        out_shape=jax.ShapeDtypeStruct((B, T, H_pad), out_dtype),
        grid_spec=pltpu.PrefetchScalarGridSpec(
            num_scalar_prefetch=0,
            grid=(B, num_q, num_kv),
            in_specs=[q_spec, kv_spec, kv_spec, wqk_spec, wqk_spec, wv_spec],
            out_specs=out_spec,
            scratch_shapes=[
                pltpu.VMEM((tq, H), jnp.bfloat16),      # cached q projection
                pltpu.VMEM((tq, 1), jnp.float32),       # running max m
                pltpu.VMEM((tq, 1), jnp.float32),       # running sum l
                pltpu.VMEM((tq, H_pad), jnp.float32),   # output accumulator
            ],
        ),
        compiler_params=pltpu.CompilerParams(
            dimension_semantics=("parallel", "parallel", "arbitrary"),
            vmem_limit_bytes=32 * 1024 * 1024,
        ),
        cost_estimate=cost,
    )(q, k, v, wq, wk, wv_p)

    return out if H_pad == H else out[..., :H]


def head_reference(k, q, v, wk, wq, wv, *, use_mask=False):
    """Pure-JAX f32 reference matching the PyTorch forward."""
    kp = k @ wk
    qp = q @ wq
    vp = v @ wv
    C = kp.shape[-1]
    weights = jnp.einsum("btc,bsc->bts", qp, kp) * (C ** -0.5)
    if use_mask:
        T = kp.shape[1]
        tril = jnp.tril(jnp.ones((T, T)))
        weights = jnp.where(tril == 0, -jnp.inf, weights)
    weights = jax.nn.softmax(weights, axis=-1)
    return weights @ vp


if __name__ == "__main__":
    B, T, E, H = 2, 16, 32, 16

    key = jax.random.PRNGKey(0)
    kk, kq, kv, kwk, kwq, kwv = jax.random.split(key, 6)

    k_in = jax.random.normal(kk, (B, T, E), dtype=jnp.float32)
    q_in = jax.random.normal(kq, (B, T, E), dtype=jnp.float32)
    v_in = jax.random.normal(kv, (B, T, E), dtype=jnp.float32)

    # Mimic nn.Linear's uniform(-1/sqrt(E), 1/sqrt(E)) init; stored as (E, H).
    bound = 1.0 / (E ** 0.5)
    wk = jax.random.uniform(kwk, (E, H), jnp.float32, -bound, bound)
    wq = jax.random.uniform(kwq, (E, H), jnp.float32, -bound, bound)
    wv = jax.random.uniform(kwv, (E, H), jnp.float32, -bound, bound)

    ok = True
    for use_mask in (False, True):
        ref = head_reference(k_in, q_in, v_in, wk, wq, wv, use_mask=use_mask)
        # (None, None): single-block path; (8, 8): exercises multi-block
        # online-softmax + causal block skipping at small shapes.
        for tiles in ((None, None), (8, 8)):
            out = head_forward(k_in, q_in, v_in, wk, wq, wv,
                               use_mask=use_mask, tq=tiles[0], tk=tiles[1])
            out = jax.block_until_ready(out)
            # bf16 MXU inputs + approx reciprocal => tolerance looser than f32.
            if not jnp.allclose(out, ref, atol=3e-2, rtol=3e-2):
                ok = False

    if ok:
        print("KERNEL_OK")
</pallas_src>

<mosaic_0001>
module attributes {stable_mosaic.version = 11 : i64} {
  func.func @_head_kernel(%arg0: i32, %arg1: i32, %arg2: i32, %arg3: memref<1x16x32xf32, #tpu.memory_space<vmem>>, %arg4: memref<1x16x32xf32, #tpu.memory_space<vmem>>, %arg5: memref<1x16x32xf32, #tpu.memory_space<vmem>>, %arg6: memref<32x16xf32, #tpu.memory_space<vmem>>, %arg7: memref<32x16xf32, #tpu.memory_space<vmem>>, %arg8: memref<32x128xf32, #tpu.memory_space<vmem>>, %arg9: memref<1x16x128xf32, #tpu.memory_space<vmem>>, %arg10: memref<16x16xbf16, #tpu.memory_space<vmem>>, %arg11: memref<16x1xf32, #tpu.memory_space<vmem>>, %arg12: memref<16x1xf32, #tpu.memory_space<vmem>>, %arg13: memref<16x128xf32, #tpu.memory_space<vmem>>) attributes {dimension_semantics = [#tpu.dimension_semantics<parallel>, #tpu.dimension_semantics<parallel>, #tpu.dimension_semantics<arbitrary>], iteration_bounds = array<i64: 2, 1, 1>, scalar_prefetch = 0 : i64, scratch_operands = 4 : i64, tpu.core_type = #tpu.core_type<tc>, window_params = [{transform_indices = @transform_0, window_bounds = array<i64: 1, 16, 32>}, {transform_indices = @transform_1, window_bounds = array<i64: 1, 16, 32>}, {transform_indices = @transform_2, window_bounds = array<i64: 1, 16, 32>}, {pipeline_mode = #tpu.pipeline_mode<synchronous>, transform_indices = @transform_3, window_bounds = array<i64: 32, 16>}, {pipeline_mode = #tpu.pipeline_mode<synchronous>, transform_indices = @transform_4, window_bounds = array<i64: 32, 16>}, {pipeline_mode = #tpu.pipeline_mode<synchronous>, transform_indices = @transform_5, window_bounds = array<i64: 32, 128>}, {transform_indices = @transform_6, window_bounds = array<i64: 1, 16, 128>}]} {
    %c0_i32 = arith.constant 0 : i32
    %0 = arith.cmpi eq, %arg2, %c0_i32 : i32
    %1 = arith.extui %0 : i1 to i32
    %c0_i32_0 = arith.constant 0 : i32
    %2 = arith.cmpi ne, %1, %c0_i32_0 : i32
    scf.if %2 {
      %cst_31 = arith.constant 0xFF800000 : f32
      %45 = vector.broadcast %cst_31 : f32 to vector<16x1xf32>
      %c0_32 = arith.constant 0 : index
      %c0_33 = arith.constant 0 : index
      %46 = vector.load %arg11[%c0_32, %c0_33] : memref<16x1xf32, #tpu.memory_space<vmem>>, vector<16x1xf32>
      tpu.vector_store %arg11[%c0_32, %c0_33], %45 {strides = array<i32>} : memref<16x1xf32, #tpu.memory_space<vmem>>, vector<16x1xf32>,
      %cst_34 = arith.constant 0.000000e+00 : f32
      %47 = vector.broadcast %cst_34 : f32 to vector<16x1xf32>
      %c0_35 = arith.constant 0 : index
      %c0_36 = arith.constant 0 : index
      %48 = vector.load %arg12[%c0_35, %c0_36] : memref<16x1xf32, #tpu.memory_space<vmem>>, vector<16x1xf32>
      tpu.vector_store %arg12[%c0_35, %c0_36], %47 {strides = array<i32>} : memref<16x1xf32, #tpu.memory_space<vmem>>, vector<16x1xf32>,
      %cst_37 = arith.constant 0.000000e+00 : f32
      %49 = vector.broadcast %cst_37 : f32 to vector<16x128xf32>
      %c0_38 = arith.constant 0 : index
      %c0_39 = arith.constant 0 : index
      %50 = vector.load %arg13[%c0_38, %c0_39] : memref<16x128xf32, #tpu.memory_space<vmem>>, vector<16x128xf32>
      tpu.vector_store %arg13[%c0_38, %c0_39], %49 {strides = array<i32>} : memref<16x128xf32, #tpu.memory_space<vmem>>, vector<16x128xf32>,
      %c0_40 = arith.constant 0 : index
      %c0_41 = arith.constant 0 : index
      %c0_42 = arith.constant 0 : index
      %51 = vector.load %arg3[%c0_40, %c0_41, %c0_42] : memref<1x16x32xf32, #tpu.memory_space<vmem>>, vector<1x16x32xf32>
      %52 = vector.shape_cast %51 : vector<1x16x32xf32> to vector<16x32xf32>
      %53 = arith.truncf %52 : vector<16x32xf32> to vector<16x32xbf16>
      %c0_43 = arith.constant 0 : index
      %c0_44 = arith.constant 0 : index
      %54 = vector.load %arg6[%c0_43, %c0_44] : memref<32x16xf32, #tpu.memory_space<vmem>>, vector<32x16xf32>
      %55 = arith.truncf %54 : vector<32x16xf32> to vector<32x16xbf16>
      %cst_45 = arith.constant dense<0.000000e+00> : vector<16x16xf32>
      %56 = tpu.matmul %53, %55, %cst_45 {dimension_numbers = #tpu.dot_dimension_numbers<[1], [0], [0], [1], [0, 0, 1, 1], [], []>} : vector<16x32xbf16>, vector<32x16xbf16>, vector<16x16xf32> -> vector<16x16xf32>
      %cst_46 = arith.constant 2.500000e-01 : f32
      %57 = vector.broadcast %cst_46 : f32 to vector<16x16xf32>
      %58 = arith.mulf %56, %57 : vector<16x16xf32>
      %59 = arith.truncf %58 : vector<16x16xf32> to vector<16x16xbf16>
      %c0_47 = arith.constant 0 : index
      %c0_48 = arith.constant 0 : index
      %60 = vector.load %arg10[%c0_47, %c0_48] : memref<16x16xbf16, #tpu.memory_space<vmem>>, vector<16x16xbf16>
      tpu.vector_store %arg10[%c0_47, %c0_48], %59 {strides = array<i32>} : memref<16x16xbf16, #tpu.memory_space<vmem>>, vector<16x16xbf16>,
    } else {
    }
    %c0 = arith.constant 0 : index
    %c0_1 = arith.constant 0 : index
    %c0_2 = arith.constant 0 : index
    %3 = vector.load %arg4[%c0, %c0_1, %c0_2] : memref<1x16x32xf32, #tpu.memory_space<vmem>>, vector<1x16x32xf32>
    %4 = vector.shape_cast %3 : vector<1x16x32xf32> to vector<16x32xf32>
    %5 = arith.truncf %4 : vector<16x32xf32> to vector<16x32xbf16>
    %c0_3 = arith.constant 0 : index
    %c0_4 = arith.constant 0 : index
    %6 = vector.load %arg7[%c0_3, %c0_4] : memref<32x16xf32, #tpu.memory_space<vmem>>, vector<32x16xf32>
    %7 = arith.truncf %6 : vector<32x16xf32> to vector<32x16xbf16>
    %cst = arith.constant dense<0.000000e+00> : vector<16x16xf32>
    %8 = tpu.matmul %5, %7, %cst {dimension_numbers = #tpu.dot_dimension_numbers<[1], [0], [0], [1], [0, 0, 1, 1], [], []>} : vector<16x32xbf16>, vector<32x16xbf16>, vector<16x16xf32> -> vector<16x16xf32>
    %9 = arith.truncf %8 : vector<16x16xf32> to vector<16x16xbf16>
    %c0_5 = arith.constant 0 : index
    %c0_6 = arith.constant 0 : index
    %c0_7 = arith.constant 0 : index
    %10 = vector.load %arg5[%c0_5, %c0_6, %c0_7] : memref<1x16x32xf32, #tpu.memory_space<vmem>>, vector<1x16x32xf32>
    %11 = vector.shape_cast %10 : vector<1x16x32xf32> to vector<16x32xf32>
    %12 = arith.truncf %11 : vector<16x32xf32> to vector<16x32xbf16>
    %c0_8 = arith.constant 0 : index
    %c0_9 = arith.constant 0 : index
    %13 = vector.load %arg8[%c0_8, %c0_9] : memref<32x128xf32, #tpu.memory_space<vmem>>, vector<32x128xf32>
    %14 = arith.truncf %13 : vector<32x128xf32> to vector<32x128xbf16>
    %cst_10 = arith.constant dense<0.000000e+00> : vector<16x128xf32>
    %15 = tpu.matmul %12, %14, %cst_10 {dimension_numbers = #tpu.dot_dimension_numbers<[1], [0], [0], [1], [0, 0, 1, 1], [], []>} : vector<16x32xbf16>, vector<32x128xbf16>, vector<16x128xf32> -> vector<16x128xf32>
    %16 = arith.truncf %15 : vector<16x128xf32> to vector<16x128xbf16>
    %c0_11 = arith.constant 0 : index
    %c0_12 = arith.constant 0 : index
    %17 = vector.load %arg10[%c0_11, %c0_12] : memref<16x16xbf16, #tpu.memory_space<vmem>>, vector<16x16xbf16>
    %cst_13 = arith.constant dense<0.000000e+00> : vector<16x16xf32>
    %18 = tpu.matmul %17, %9, %cst_13 {dimension_numbers = #tpu.dot_dimension_numbers<[1], [1], [0], [0], [0, 0, 1, 0], [], []>} : vector<16x16xbf16>, vector<16x16xbf16>, vector<16x16xf32> -> vector<16x16xf32>
    %c0_14 = arith.constant 0 : index
    %c0_15 = arith.constant 0 : index
    %19 = vector.load %arg11[%c0_14, %c0_15] : memref<16x1xf32, #tpu.memory_space<vmem>>, vector<16x1xf32>
    %cst_16 = arith.constant dense<0xFF800000> : vector<16xf32>
    %20 = vector.multi_reduction <maximumf>, %18, %cst_16 [1] : vector<16x16xf32> to vector<16xf32>
    %21 = vector.shape_cast %20 : vector<16xf32> to vector<16x1xf32>
    %22 = arith.maximumf %19, %21 : vector<16x1xf32>
    %23 = arith.subf %19, %22 : vector<16x1xf32>
    %24 = math.exp %23 : vector<16x1xf32>
    %25 = vector.broadcast %22 : vector<16x1xf32> to vector<16x16xf32>
    %26 = arith.subf %18, %25 : vector<16x16xf32>
    %27 = math.exp %26 : vector<16x16xf32>
    %c0_17 = arith.constant 0 : index
    %c0_18 = arith.constant 0 : index
    %28 = vector.load %arg12[%c0_17, %c0_18] : memref<16x1xf32, #tpu.memory_space<vmem>>, vector<16x1xf32>
    %29 = arith.mulf %24, %28 : vector<16x1xf32>
    %cst_19 = arith.constant dense<0.000000e+00> : vector<16xf32>
    %30 = vector.multi_reduction <add>, %27, %cst_19 [1] : vector<16x16xf32> to vector<16xf32>
    %31 = vector.shape_cast %30 : vector<16xf32> to vector<16x1xf32>
    %32 = arith.addf %29, %31 : vector<16x1xf32>
    %c0_20 = arith.constant 0 : index
    %c0_21 = arith.constant 0 : index
    %33 = vector.load %arg12[%c0_20, %c0_21] : memref<16x1xf32, #tpu.memory_space<vmem>>, vector<16x1xf32>
    tpu.vector_store %arg12[%c0_20, %c0_21], %32 {strides = array<i32>} : memref<16x1xf32, #tpu.memory_space<vmem>>, vector<16x1xf32>,
    %c0_22 = arith.constant 0 : index
    %c0_23 = arith.constant 0 : index
    %34 = vector.load %arg13[%c0_22, %c0_23] : memref<16x128xf32, #tpu.memory_space<vmem>>, vector<16x128xf32>
    %35 = vector.broadcast %24 : vector<16x1xf32> to vector<16x128xf32>
    %36 = arith.mulf %35, %34 : vector<16x128xf32>
    %37 = arith.truncf %27 : vector<16x16xf32> to vector<16x16xbf16>
    %cst_24 = arith.constant dense<0.000000e+00> : vector<16x128xf32>
    %38 = tpu.matmul %37, %16, %cst_24 {dimension_numbers = #tpu.dot_dimension_numbers<[1], [0], [0], [1], [0, 0, 1, 1], [], []>} : vector<16x16xbf16>, vector<16x128xbf16>, vector<16x128xf32> -> vector<16x128xf32>
    %39 = arith.addf %36, %38 : vector<16x128xf32>
    %c0_25 = arith.constant 0 : index
    %c0_26 = arith.constant 0 : index
    %40 = vector.load %arg13[%c0_25, %c0_26] : memref<16x128xf32, #tpu.memory_space<vmem>>, vector<16x128xf32>
    tpu.vector_store %arg13[%c0_25, %c0_26], %39 {strides = array<i32>} : memref<16x128xf32, #tpu.memory_space<vmem>>, vector<16x128xf32>,
    %c0_27 = arith.constant 0 : index
    %c0_28 = arith.constant 0 : index
    %41 = vector.load %arg11[%c0_27, %c0_28] : memref<16x1xf32, #tpu.memory_space<vmem>>, vector<16x1xf32>
    tpu.vector_store %arg11[%c0_27, %c0_28], %22 {strides = array<i32>} : memref<16x1xf32, #tpu.memory_space<vmem>>, vector<16x1xf32>,
    %c0_i32_29 = arith.constant 0 : i32
    %42 = arith.cmpi eq, %arg2, %c0_i32_29 : i32
    %43 = arith.extui %42 : i1 to i32
    %c0_i32_30 = arith.constant 0 : i32
    %44 = arith.cmpi ne, %43, %c0_i32_30 : i32
    scf.if %44 {
      %c0_31 = arith.constant 0 : index
      %c0_32 = arith.constant 0 : index
      %45 = vector.load %arg12[%c0_31, %c0_32] : memref<16x1xf32, #tpu.memory_space<vmem>>, vector<16x1xf32>
      %46 = tpu.reciprocal %45 {approx = true} : vector<16x1xf32> -> vector<16x1xf32>
      %c0_33 = arith.constant 0 : index
      %c0_34 = arith.constant 0 : index
      %47 = vector.load %arg13[%c0_33, %c0_34] : memref<16x128xf32, #tpu.memory_space<vmem>>, vector<16x128xf32>
      %48 = vector.broadcast %46 : vector<16x1xf32> to vector<16x128xf32>
      %49 = arith.mulf %47, %48 : vector<16x128xf32>
      %c0_35 = arith.constant 0 : index
      %c0_36 = arith.constant 0 : index
      %c0_37 = arith.constant 0 : index
      %50 = vector.load %arg9[%c0_35, %c0_36, %c0_37] : memref<1x16x128xf32, #tpu.memory_space<vmem>>, vector<1x16x128xf32>
      %51 = vector.shape_cast %50 : vector<1x16x128xf32> to vector<16x128xf32>
      %52 = vector.shape_cast %49 : vector<16x128xf32> to vector<1x16x128xf32>
      tpu.vector_store %arg9[%c0_35, %c0_36, %c0_37], %52 {strides = array<i32>} : memref<1x16x128xf32, #tpu.memory_space<vmem>>, vector<1x16x128xf32>,
    } else {
    }
    return
  }
  func.func @transform_0(%arg0: i32, %arg1: i32, %arg2: i32) -> (i32, i32, i32) {
    %c0_i32 = arith.constant 0 : i32
    %c0_i32_0 = arith.constant 0 : i32
    return %arg0, %arg1, %c0_i32 : i32, i32, i32
  }
  func.func @transform_1(%arg0: i32, %arg1: i32, %arg2: i32) -> (i32, i32, i32) {
    %c0_i32 = arith.constant 0 : i32
    %c0_i32_0 = arith.constant 0 : i32
    return %arg0, %arg2, %c0_i32 : i32, i32, i32
  }
  func.func @transform_2(%arg0: i32, %arg1: i32, %arg2: i32) -> (i32, i32, i32) {
    %c0_i32 = arith.constant 0 : i32
    %c0_i32_0 = arith.constant 0 : i32
    return %arg0, %arg2, %c0_i32 : i32, i32, i32
  }
  func.func @transform_3(%arg0: i32, %arg1: i32, %arg2: i32) -> (i32, i32) {
    %c0_i32 = arith.constant 0 : i32
    %c0_i32_0 = arith.constant 0 : i32
    %c0_i32_1 = arith.constant 0 : i32
    return %c0_i32, %c0_i32_0 : i32, i32
  }
  func.func @transform_4(%arg0: i32, %arg1: i32, %arg2: i32) -> (i32, i32) {
    %c0_i32 = arith.constant 0 : i32
    %c0_i32_0 = arith.constant 0 : i32
    %c0_i32_1 = arith.constant 0 : i32
    return %c0_i32, %c0_i32_0 : i32, i32
  }
  func.func @transform_5(%arg0: i32, %arg1: i32, %arg2: i32) -> (i32, i32) {
    %c0_i32 = arith.constant 0 : i32
    %c0_i32_0 = arith.constant 0 : i32
    %c0_i32_1 = arith.constant 0 : i32
    return %c0_i32, %c0_i32_0 : i32, i32
  }
  func.func @transform_6(%arg0: i32, %arg1: i32, %arg2: i32) -> (i32, i32, i32) {
    %c0_i32 = arith.constant 0 : i32
    %c0_i32_0 = arith.constant 0 : i32
    return %arg0, %arg1, %c0_i32 : i32, i32, i32
  }
}

</mosaic_0001>

<bundles_post_ra>
// kernel: tpu_custom_call.1
= control target key start
LH: loop header
LB: loop body
LE: loop exit
PB: predicated region body
PF: predicated region fallthrough
CT: control target
= control target key end

     0   :  { %11 = vsyncpa [#allocation7], 0  ;;  %s1434_s0 = inlined_call_operand.vmem [shape: f32[2,16,32], index: 0, kind: input, shape index: {}]   ;;  %s1435_s1 = inlined_call_operand.vmem [shape: f32[2,16,32], index: 1, kind: input, shape index: {}]   ;;  %s1436_s2 = inlined_call_operand.vmem [shape: f32[2,16,32], index: 2, kind: input, shape index: {}]   ;;  %s1437_s3 = inlined_call_operand.vmem [shape: f32[32,16], index: 3, kind: input, shape index: {}]   ;;  %s1438_s4 = inlined_call_operand.vmem [shape: f32[32,16], index: 4, kind: input, shape index: {}]   ;;  %s1439_s5 = inlined_call_operand.hbm [shape: f32[32,128], index: 5, kind: input, shape index: {}]   ;;  %s1440_s6 = inlined_call_operand.hbm [shape: f32[2,16,128], index: 6, kind: output, shape index: {}]  }
   0x1   :  { %12 = vsyncpa [#allocation8], 0 }
   0x2   :  { %14 = vsyncpa [#allocation8 + $0x1], 0  ;;  %s1207_s21 = smov 0   ;;  %s1209_s22 = smov 0  }
   0x3   :  { %s1211_s23 = smov 0   ;;  %s1213_s24 = smov 0  }
   0x4   :  { %s1215_s25 = smov 0   ;;  %s1217_s26 = smov 0  }
   0x5 LB: > { %s885_s27 = sadd.s32 4294967295, %s1160_s26   ;;  %s886_s28 = sadd.s32 4294967294, %s1160_s26   ;;  %s1160_s26 = sphi %s1217_s26, %s20_s26   ;;  %s1156_s25 = sphi %s1215_s25, %s1458_s25   ;;  %s1152_s24 = sphi %s1213_s24, %s1457_s24   ;;  %s1148_s23 = sphi %s1211_s23, %s1456_s23   ;;  %s1144_s22 = sphi %s1209_s22, %s1455_s22   ;;  %s1140_s21 = sphi %s1207_s21, %s1454_s21  }
   0x6   : > { %s39_s29 = sadd.s32 1, %s1156_s25  ;;  %s195_s30 = sadd.s32 1, %s1148_s23 }
   0x7   : > { %p41_p0 = scmp.ge.s32.totalorder %s39_s29, 2  ;;  %p205_p1 = scmp.ne.s32.totalorder %s1148_s23, %s1144_s22 }
   0x8   : > { %p206_p2 = scmp.eq.s32.totalorder %s885_s27, 1  ;;  %p211_p3 = scmp.ne.s32.totalorder %s1144_s22, %s1140_s21 }
   0x9   : > { %s1460_s29 = smov (%p41_p0, %s39_s29), 0  ;;  %p212_p5 = scmp.eq.s32.totalorder %s886_s28, 1 }
   0xa   : > { %p1247_p4 = por %p206_p2, %p205_p1  ;;  %s190_s8 = ssub.s32 %s1156_s25, %s1460_s29 }
   0xb   : > { %p887_p6 = scmp.ge.s32.totalorder %s1160_s26, 1  ;;  %p193_p7 = scmp.eq.s32.totalorder %s190_s8, 0 }
   0xc   : > { %s1445_s7 = scalar_select %p1247_p4, 1, 0 }
   0xd   : > { %p1254_p8 = por %p212_p5, %p211_p3  ;;  %p219_p9 = scmp.lt.s32.totalorder %s1160_s26, 3 }
   0xe   : > { %s1260_s10 = scalar_select %p193_p7, %s1148_s23, %s195_s30  }
   0xf   : > { %s1446_s9 = scalar_select %p1254_p8, 1, 0 }
  0x10   : > { %p1262_p10 = pnand %p887_p6, %p219_p9  ;;  %p1266_p11 = scmp.eq.s32.totalorder %s885_s27, 0 }
  0x11   : > { %s1162_s13 = smov [#allocation6]   ;;  %s1050_s18 = scalar_lea.hbm %s1439_s5, 512 }
  0x12   : > { %s1447_s11 = scalar_select %p1262_p10, 1, 0 }
  0x13   : > { %s1448_s12 = scalar_select %p1266_p11, 1, 0 }
  0x14   : > { %p968_p12 = pneg %p1262_p10  ;;  %s237_s14 = sshll.u32 %s1162_s13, 4  ;;  %s238_s14 = int_to_ptr.vmem [resolvable:$true] %s237_s14 }
  0x15   : > { %p1051_p0 = scmp.ne.s32.totalorder %s1439_s5, %s1050_s18  ;;  %p1057_p5 = scmp.lt.u32.totalorder %s1050_s18, %s1439_s5 }
  0x16   : > { %p1274_p13 = pnand %p1266_p11, %p968_p12 }
  0x18   : > { %p1052_p1 = pneg %p1274_p13 }
  0x1a   : > { %p1053_p2 = pnand %p1052_p1, %p1051_p0 }
  0x1c   : > { %p1054_p3 = pneg %p1053_p2 }
  0x1e   : > { %p1059_p6 = pnand %p1057_p5, %p1054_p3 }
  0x20   : > { %1062 = shalt.err (!%p1059_p6)
}
  0x21   : > { %s1063_s30 = scalar_lea.vmem %s238_s14, 512  ;;  %p1071_p8 = scmp.lt.s32.totalorder %s238_s14, %s238_s14 }
  0x22   : > { %p1064_p7 = scmp.ne.s32.totalorder %s238_s14, %s1063_s30  ;;  %p1072_p4 = scmp.lt.s32.totalorder %s1063_s30, %s1063_s30 }
  0x24   : > { %p1066_p9 = pnand %p1064_p7, %p1052_p1  ;;  %p1073_p11 = por %p1072_p4, %p1071_p8 }
  0x26   : > { %p1067_p12 = pneg %p1066_p9 }
  0x28   : > { %p1074_p10 = pnand %p1073_p11, %p1067_p12 }
  0x2a   : > { %1077 = shalt.err (!%p1074_p10)
}
  0x2b   : > { %s1163_s8 = smov 128   ;;  %s1164_s13 = smov 8  }
  0x2c   : > { %971 = dma.hbm_to_vmem [thread:$0]  (!%p1274_p13), %s1439_s5, 512, %s238_s14, [#allocation7], %s1163_s8, %s1163_s8, %s1164_s13  }
  0x2d   : > { %p1450_p0 = scmp.ne.s32.totalorder %s1447_s11, 0 }
  0x2e   : > { %p1451_p2 = scmp.ne.s32.totalorder (!%p1450_p0), %s1448_s12, 0 }
  0x2f   : > { %292 = sbr.rel (%p1450_p0) target bundleno = 1105 (0x451), region = 44 }
  0x36   : > { %1131 = dma.done.wait (%p1451_p2), [#allocation7], 512  }
  0x37   : > { %1133 = vsyncadd (%p1451_p2), [#allocation7], 4294966784  ;;  %p345_p4 = scmp.lt.s32.totalorder %s1152_s24, 1  ;;  %v1165_v0 = vmov 0.0   ;;  %vm1166_vm0 = vmmov 0   ;;  %v390_v1 = vld [vmem:[%s1437_s3] sm:$0xff] }
  0x38   : > { %926 = vmatprep.subr.bf16.mxu0 %v1165_v0  ;;  %934 = vmatprep.subr.bf16.mxu1 %v1165_v0  ;;  %v391_v2 = vld [vmem:[%s1437_s3 + $0x8] sm:$0xff]  ;;  %v449_v3 = vld [vmem:[%s1438_s4] sm:$0xff]  ;;  %v392_v6 = vld [vmem:[%s1437_s3 + $0x10] sm:$0xff]  ;;  %vm396_vm1 = vcmask 261120   ;;  %vm444_vm2 = vcmask 130048   ;;  %vm380_vm3 = vcmask 7168  }
  0x39   : > { %930 = vmatprep.mubr.msk.bf16.mxu0 %vm1166_vm0, %v1165_v0  ;;  %938 = vmatprep.mubr.msk.bf16.mxu1 %vm1166_vm0, %v1165_v0  ;;  %s346_s11 = scalar_select %p345_p4, %s1152_s24, 1  ;;  %v394_v4 = vpack.c.bf16 %v391_v2, %v390_v1  ;;  %v450_v5 = vld [vmem:[%s1438_s4 + $0x8] sm:$0xff]  ;;  %v393_v7 = vld [vmem:[%s1437_s3 + $0x18] sm:$0xff]  ;;  %v451_v9 = vld [vmem:[%s1438_s4 + $0x10] sm:$0xff]  ;;  %v1167_v38 = vmov -inf   ;;  %383 = vst.msk [vmem:[#allocation4] sm:$0xff] %vm380_vm3, %v1165_v0 }
  0x3a   : > { %v453_v8 = vpack.c.bf16 %v450_v5, %v449_v3  ;;  %v452_v10 = vld [vmem:[%s1438_s4 + $0x18] sm:$0xff]  ;;  %v395_v11 = vpack.c.bf16 %v393_v7, %v392_v6  ;;  %v504_v33 = vld [vmem:[#allocation6] sm:$0xff]  ;;  %v505_v34 = vld [vmem:[#allocation6 + $0x8] sm:$0xff]  ;;  %381 = vst.msk [vmem:[#allocation3] sm:$0xff] %vm380_vm3, %v1167_v38  ;;  %v1168_v49 = vmov 0   ;;  %s912_s18 = sshll.u32 %s1152_s24, 8 }
  0x3b   : > { %s1308_s14 = sshll.u32 %s346_s11, 4  ;;  %927 = vmatpush3.bf16.msra.mxu0 %v394_v4  ;;  %v454_v14 = vpack.c.bf16 %v452_v10, %v451_v9  ;;  %v506_v35 = vld [vmem:[#allocation6 + $0x10] sm:$0xff]  ;;  %v508_v36 = vpack.c.bf16 %v505_v34, %v504_v33  ;;  %v507_v37 = vld [vmem:[#allocation6 + $0x18] sm:$0xff]  ;;  %382 = vst.msk [vmem:[#allocation3 + $0x8] sm:$0xff] %vm380_vm3, %v1167_v38  ;;  %384 = vst.msk [vmem:[#allocation4 + $0x8] sm:$0xff] %vm380_vm3, %v1165_v0  ;;  %1036 = vset.pattern.permute.xlu1 %v1168_v49  ;;  %s1386_s27 = scalar_lea.hbm %s1440_s6, %s912_s18 }
  0x3c   : > { %s352_s8 = scalar_lea.vmem %s1434_s0, %s1308_s14  ;;  %s362_s20 = scalar_lea.vmem %s1435_s1, %s1308_s14  ;;  %935 = vmatpush3.bf16.msra.mxu1 %v453_v8  ;;  %928 = vmatprep.subr.bf16.mxu0 %v1165_v0  ;;  %v509_v39 = vpack.c.bf16 %v507_v37, %v506_v35 }
  0x3d   : > { %v387_v12 = vld [vmem:[%s352_s8] sm:$0xff]  ;;  %v388_v13 = vld [vmem:[%s352_s8 + $0x8] sm:$0xff]  ;;  %936 = vmatprep.subr.bf16.mxu1 %v1165_v0  ;;  %s372_s17 = scalar_lea.vmem %s1436_s2, %s1308_s14  ;;  %1037 = vset.pattern.permute.xlu0 %v1168_v49  ;;  %s341_s14 = sand.u32 1, %s1144_s22  }
  0x3e   : > { %v446_v15 = vld [vmem:[%s362_s20] sm:$0xff]  ;;  %v447_v16 = vld [vmem:[%s362_s20 + $0x8] sm:$0xff]  ;;  %v389_v17 = vpack.c.bf16 %v388_v13, %v387_v12  ;;  %s892_s11 = sshll.u32 %s341_s14, 4  ;;  %s1388_s28 = scalar_lea.sflag [#allocation8], %s341_s14 }
  0x3f   : > { %929 = vmatpush3.bf16.msra.mxu0 %v395_v11  ;;  %v448_v18 = vpack.c.bf16 %v447_v16, %v446_v15  ;;  %v501_v40 = vld [vmem:[%s372_s17] sm:$0xff]  ;;  %v502_v41 = vld [vmem:[%s372_s17 + $0x8] sm:$0xff]  ;;  %s343_s12 = scalar_lea.vmem [#allocation9], %s892_s11  ;;  %p1452_p10 = scmp.ne.s32.totalorder %s1445_s7, 0 }
  0x40   : > { %937 = vmatpush3.bf16.msra.mxu1 %v454_v14  ;;  %942 = vmatprep.subr.bf16.mxu0 %v1165_v0  ;;  %v503_v42 = vpack.c.bf16 %v502_v41, %v501_v40  ;;  %v636_v14 = vld [vmem:[#allocation4] sm:$0xff]  ;;  %s755_s15 = sshll.u32 %s343_s12, 4  ;;  %s1169_s24 = smov [#allocation9]   ;;  %s1381_s15 = int_to_ptr.vmem [resolvable:$true] %s755_s15 }
  0x41   : > { %950 = vmatprep.subr.bf16.mxu1 %v1165_v0  ;;  %v604_v50 = vld [vmem:[#allocation3] sm:$0xff]  ;;  %s1078_s30 = scalar_lea.vmem %s1381_s15, 256  ;;  %s1082_s13 = sshll.u32 %s1169_s24, 4  ;;  %s1083_s13 = int_to_ptr.vmem [resolvable:$false] %s1082_s13 }
  0x42   : > { %931 = vmatmul.mubr.msk.bf16.vlgmr.msra.gmra.mrb[0].mxu0 %vm396_vm1, %v389_v17  ;;  %v605_v53 = vld [vmem:[#allocation3 + $0x8] sm:$0xff]  ;;  %v637_v17 = vld [vmem:[#allocation4 + $0x8] sm:$0xff]  ;;  %p1079_p8 = scmp.ne.s32.totalorder %s1381_s15, %s1078_s30  ;;  %s1084_s8 = scalar_lea.vmem %s1083_s13, 512 }
  0x43   : > { %939 = vmatmul.mubr.msk.bf16.vlgmr.msra.gmra.mrb[0].mxu1 %vm396_vm1, %v448_v18  ;;  %946 = vmatprep.mubr.msk.bf16.mxu0 %vm1166_vm0, %v1165_v0  ;;  %p1085_p1 = scmp.lt.s32.totalorder %s1381_s15, %s1083_s13  ;;  %p1086_p3 = scmp.lt.s32.totalorder %s1084_s8, %s1078_s30 }
  0x44   : > { %952 = vmatprep.mubr.msk.bf16.mxu1 %vm1166_vm0, %v1165_v0  ;;  %943 = vmatpush3.bf16.msra.mxu0 %v508_v36  ;;  %p1080_p11 = pnand %p1079_p8, %p1452_p10 }
  0x45   : > { %944 = vmatprep.subr.bf16.mxu0 %v1165_v0  ;;  %p1087_p5 = por %p1086_p3, %p1085_p1 }
  0x46   : > { %p1081_p13 = pneg %p1080_p11 }
  0x48   : > { %945 = vmatpush3.bf16.msra.mxu0 %v509_v39  ;;  %p1088_p6 = pnand %p1087_p5, %p1081_p13 }
  0x49   : > { %956 = vmatprep.subr.bf16.mxu0 %v1165_v0 }
  0x4b   : > { %947 = vmatmul.mubr.msk.bf16.vlgmr.msra.gmra.mrb[4].mxu0 %vm396_vm1, %v503_v42 }
  0x4c   : > { %958 = vmatprep.mubr.msk.bf16.mxu0 %vm1166_vm0, %v1165_v0 }
 0x115   : > { %v434_v19 = vpop.f32.mrb[0].mxu0 }
 0x116   : > { %v493_v20 = vpop.f32.mrb[0].mxu1  ;;  %v932_v21 = vpop.f32.mrb[1].mxu0  ;;  %v441_v24 = vmul.f32 0.25, %v434_v19 }
 0x117   : > { %v940_v22 = vpop.f32.mrb[1].mxu1  ;;  %v437_v23 = vpop.f32.mrb[2].mxu0 }
 0x118   : > { %v442_v25 = vmul.f32 0.25, %v437_v23  ;;  %v496_v26 = vpop.f32.mrb[2].mxu1  ;;  %v933_v27 = vpop.f32.mrb[3].mxu0 }
 0x119   : > { %v500_v28 = vpack.c.bf16 %v496_v26, %v493_v20  ;;  %v941_v29 = vpop.f32.mrb[3].mxu1 }
 0x11a   : > { %v443_v30 = vpack.c.bf16 %v442_v25, %v441_v24 }
 0x11b   : > { %v561_v31 = vsel %vm444_vm2, %v500_v28, 0 }
 0x11c   : > { %445 = vst.msk [vmem:[#allocation2] sm:$0xff] %vm444_vm2, %v443_v30  ;;  %951 = vmatpush3.bf16.xpose.msra.mxu1 %v561_v31 }
 0x11e   : > { %v547_v58 = vpop.f32.mrb[4].mxu0 }
 0x11f   : > { %v948_v59 = vpop.f32.mrb[5].mxu0 }
 0x120   : > { %v550_v60 = vpop.f32.mrb[6].mxu0 }
 0x121   : > { %v554_v61 = vpack.c.bf16 %v550_v60, %v547_v58  ;;  %v949_v62 = vpop.f32.mrb[7].mxu0 }
 0x123   : > { %v555_v32 = vld [vmem:[#allocation2] sm:$0xff]  ;;  %957 = vmatpush3.bf16.msra.mxu0 %v554_v61 }
 0x124   : > { %953 = vmatmul.mubr.msk.bf16.vlgmr.msra.gmra.mrb[4].mxu1 %vm444_vm2, %v555_v32 }
 0x1f7   : > { %v597_v43 = vpop.f32.mrb[4].mxu1 }
 0x1f8   : > { %v954_v44 = vpop.f32.mrb[5].mxu1  ;;  %v606_v45 = vsel %vm444_vm2, %v597_v43, -inf }
 0x1f9   : > { %607 = vmax.xlane.f32.xlu0 %v606_v45  ;;  %v600_v46 = vpop.f32.mrb[6].mxu1 }
 0x1fa   : > { %v955_v47 = vpop.f32.mrb[7].mxu1  ;;  %v609_v48 = vsel %vm444_vm2, %v600_v46, -inf }
 0x1fd   : > { %610 = vmax.xlane.f32.xlu0 %v609_v48 }
 0x286   : > { %v608_v51 = vpop.xlane.xlu0 %607 }
 0x287   : > { %v612_v52 = vmax.f32 %v604_v50, %v608_v51 }
 0x289   : > { %v614_v54 = vsub.f32 %v604_v50, %v612_v52  ;;  %714 = vst.msk [vmem:[#allocation3] sm:$0xff] %vm380_vm3, %v612_v52  ;;  %622 = vperm.xlu1 %1036, %v612_v52  }
 0x28a   : > { %v611_v55 = vpop.xlane.xlu0 %610 }
 0x28b   : > { %v613_v56 = vmax.f32 %v605_v53, %v611_v55  ;;  %v616_v11 = vmul.f32 1.442695, %v614_v54 }
 0x28d   : > { %v615_v57 = vsub.f32 %v605_v53, %v613_v56  ;;  %715 = vst.msk [vmem:[#allocation3 + $0x8] sm:$0xff] %vm380_vm3, %v613_v56  ;;  %627 = vperm.xlu1 %1036, %v613_v56  }
 0x28f   : > { %v618_v10 = vmul.f32 1.442695, %v615_v57 }
 0x308   : > { %v623_v63 = vpop.permute.xlu1 %622 }
 0x309   : > { %v630_v0 = vsub.f32 %v597_v43, %v623_v63 }
 0x30b   : > { %v632_v1 = vmul.f32 1.442695, %v630_v0 }
 0x30c   : > { %v628_v2 = vpop.permute.xlu1 %627 }
 0x30d   : > { %1038 = vpow2.f32 %v632_v1  ;;  %v631_v3 = vsub.f32 %v600_v46, %v628_v2 }
 0x30f   : > { %v634_v4 = vmul.f32 1.442695, %v631_v3 }
 0x311   : > { %1040 = vpow2.f32 %v634_v4 }
 0x312   : > { %1042 = vpow2.f32 %v618_v10 }
 0x313   : > { %1044 = vpow2.f32 %v616_v11 }
 0x317   : > { %v1039_v5 = vpop.eup %1038 }
 0x318   : > { %v640_v6 = vsel %vm444_vm2, %v1039_v5, 0.0 }
 0x319   : > { %641 = vadd.xlane.f32.xlu0 %v640_v6 }
 0x31b   : > { %v1041_v7 = vpop.eup %1040 }
 0x31c   : > { %v643_v8 = vsel %vm444_vm2, %v1041_v7, 0.0  ;;  %v665_v9 = vpack.c.bf16 %v1041_v7, %v1039_v5  ;;  %v1043_v12 = vpop.eup %1042 }
 0x31d   : > { %644 = vadd.xlane.f32.xlu1 %v643_v8  ;;  %v1045_v13 = vpop.eup %1044  ;;  %v639_v19 = vmul.f32 %v1043_v12, %v637_v17 }
 0x31e   : > { %959 = vmatmul.mubr.msk.bf16.vlgmr.msra.gmra.mrb[8].mxu0 %vm444_vm2, %v665_v9  ;;  %v638_v15 = vmul.f32 %v1045_v13, %v636_v14 }
 0x32e   : > { %660 = vperm.xlu1 %1036, %v1043_v12  }
 0x32f   : > { %655 = vperm.xlu0 %1037, %v1045_v13  }
 0x3a6   : > { %v642_v16 = vpop.xlane.xlu0 %641 }
 0x3a7   : > { %v646_v18 = vadd.f32 %v642_v16, %v638_v15 }
 0x3a9   : > { %649 = vst.msk [vmem:[#allocation4] sm:$0xff] %vm380_vm3, %v646_v18 }
 0x3aa   : > { %v645_v20 = vpop.xlane.xlu1 %644 }
 0x3ab   : > { %v647_v21 = vadd.f32 %v645_v20, %v639_v19 }
 0x3ad   : > { %650 = vst.msk [vmem:[#allocation4 + $0x8] sm:$0xff] %vm380_vm3, %v647_v21 }
 0x3ae   : > { %v656_v30 = vpop.permute.xlu0 %655  ;;  %v661_v32 = vpop.permute.xlu1 %660 }
 0x3af   : > { %v663_v31 = vmul.f32 0.0, %v656_v30  ;;  %v664_v35 = vmul.f32 0.0, %v661_v32 }
 0x3b0   : > { %v719_v22 = vld [vmem:[#allocation4] sm:$0xff] }
 0x3b1   : > { %1046 = vrcp.f32 %v719_v22 }
 0x3b4   : > { %v720_v23 = vld [vmem:[#allocation4 + $0x8] sm:$0xff] }
 0x3b5   : > { %1048 = vrcp.f32 %v720_v23 }
 0x3bb   : > { %v1047_v24 = vpop.eup %1046 }
 0x3bc   : > { %727 = vperm.xlu0 %1037, %v1047_v24  }
 0x3bf   : > { %v1049_v25 = vpop.eup %1048 }
 0x3c0   : > { %732 = vperm.xlu0 %1037, %v1049_v25  }
 0x3f1   : > { %v703_v26 = vpop.f32.mrb[8].mxu0 }
 0x3f2   : > { %v960_v27 = vpop.f32.mrb[9].mxu0  ;;  %v710_v33 = vadd.f32 %v703_v26, %v663_v31 }
 0x3f3   : > { %v706_v28 = vpop.f32.mrb[10].mxu0 }
 0x3f4   : > { %v961_v29 = vpop.f32.mrb[11].mxu0  ;;  %v711_v37 = vadd.f32 %v706_v28, %v664_v35 }
 0x43b   : > { %v728_v34 = vpop.permute.xlu0 %727 }
 0x43c   : > { %v735_v36 = vmul.f32 %v728_v34, %v710_v33 }
 0x43e   : > { %737 = vst [vmem:[%s343_s12] sm:$0xff] %v735_v36 }
 0x43f   : > { %v733_v38 = vpop.permute.xlu0 %732 }
 0x440   : > { %v736_v39 = vmul.f32 %v733_v38, %v711_v37 }
 0x442   : > { %738 = vst [vmem:[%s343_s12 + $0x8] sm:$0xff] %v736_v39 }
 0x443   : > { %1091 = shalt.err (!%p1088_p6)
}
 0x444   : > { %s1092_s16 = scalar_lea.hbm %s1386_s27, 256  ;;  %s1096_s11 = scalar_lea.hbm %s1440_s6, 512 }
 0x445   : > { %p1093_p7 = scmp.ne.s32.totalorder %s1386_s27, %s1092_s16  ;;  %p1097_p0 = scmp.lt.u32.totalorder %s1386_s27, %s1440_s6 }
 0x446   : > { %p1098_p2 = scmp.lt.u32.totalorder %s1096_s11, %s1092_s16  ;;  %p1100_p8 = scmp.lt.u32.totalorder %s1092_s16, %s1386_s27 }
 0x447   : > { %p1094_p9 = pnand %p1093_p7, %p1452_p10 }
 0x448   : > { %p1099_p4 = por %p1098_p2, %p1097_p0 }
 0x449   : > { %p1095_p12 = pneg %p1094_p9 }
 0x44a   : > { %p1101_p11 = por %p1100_p8, %p1099_p4 }
 0x44c   : > { %p1102_p13 = pnand %p1101_p11, %p1095_p12 }
 0x44e   : > { %1105 = shalt.err (!%p1102_p13)
}
 0x44f   : > { %s1170_s19 = smov 128   ;;  %s1171_s20 = smov 8  }
 0x450   : > { %966 = dma.vmem_to_hbm [thread:$0]  (%p1452_p10), %s1381_s15, 256, %s1386_s27, %s1388_s28, %s1170_s19, %s1170_s19, %s1171_s20  }
 0x451 PF: > { %p978_p1 = scmp.ge.s32.totalorder %s1160_s26, 2  ;;  %s770_s30 = sand.u32 1, %s1140_s21  }
 0x452   : > { %p1453_p3 = scmp.ne.s32.totalorder %s1446_s9, 0  ;;  %s771_s24 = scalar_lea.sflag [#allocation8], %s770_s30 }
 0x454   : > { %p973_p5 = pnand %p978_p1, %p1453_p3 }
 0x456   : > { %1135 = dma.done.wait (!%p973_p5), %s771_s24, 256  }
 0x457   : > { %1137 = vsyncadd (!%p973_p5), %s771_s24, 4294967040  ;;  %s20_s26 = sadd.s32 1, %s1160_s26   ;;  %s1454_s21 = smov %s1144_s22 }
 0x458   : > { %p17_p6 = scmp.ge.s32.totalorder %s20_s26, 4   ;;  %s1455_s22 = smov %s1148_s23 }
 0x459   : > { %s1456_s23 = smov %s1260_s10  ;;  %s1457_s24 = smov %s1156_s25 }
 0x45a   : > { %s1458_s25 = smov %s1460_s29  ;;  %19 = sbr.rel (!%p17_p6) target bundleno = 5 (0x5), region = 98 }
 0x461   :  { %776 = vsyncpa [#allocation7], 1 }
 0x462   :  { %778 = vsyncpa [#allocation7 + $0x1], 1 }
 0x463   :  { %779 = vsyncpa [#allocation8], 1 }
 0x464   :  { %781 = vsyncpa [#allocation8 + $0x1], 1 }

</bundles_post_ra>
